<compile_context>
chip_gen: v6e
topology: v6e:2x2x1
jax: 0.10.0
libtpu: 0.0.40
codegen_flags: <defaults>
</compile_context>

<pallas_src>
import math
from functools import partial

import jax
import jax.numpy as jnp
from jax import lax
from jax.experimental import pallas as pl
from jax.experimental.pallas import tpu as pltpu


# --------------------------- Jacobi recurrence coeffs ------------------------

def _jacobi_thetas(i, a, b):
    th_k = (2 * i + a + b) * (2 * i + a + b - 1) / (2 * i * (i + a + b))
    th_k1 = (2 * i + a + b - 1) * (a * a - b * b) / (
        2 * i * (i + a + b) * (2 * i + a + b - 2))
    th_k2 = (i + a - 1) * (i + b - 1) * (2 * i + a + b) / (
        i * (i + a + b) * (2 * i + a + b - 2))
    return th_k, th_k1, th_k2


# ------------------------------ fused Pallas kernel --------------------------

def _kajn_fused_kernel(x_ref, mint_ref, mval_ref, bias_ref, w_ref, o_ref, bas_ref, *,
                       order, a, b, eps, kH, kW, dil, Wp, n_valid,
                       mm_dtype, compute_dtype):
    """One (group, batch) grid step, fully in VMEM.

    x_ref   : (Cin_g, Lp)   zero-padded input image, row-major flattened (incl. pad ring)
    mint_ref: (1, Lp)       1.0 where the flat position is an interior (non-pad) pixel
    mval_ref: (1, S)        1.0 where the output lane is a real column (s % Wp < Wo)
    bias_ref: (Cout_g, S)   precomputed P0-term contribution (batch independent)
    w_ref   : (KK, Cout_g, T*Cin_g) fused per-tap weights; T = order+1 terms
              (t=0: base conv on raw x, t=1..order: poly conv on P_t)
    o_ref   : (Cout_g, S)   S = Ho*Wp; lanes with (s % Wp) >= Wo are scratch columns
    bas_ref : (T*Cin_g, Lp) VMEM scratch holding the masked Jacobi basis
    """
    cin_g = x_ref.shape[0]
    s = o_ref.shape[-1]

    x = x_ref[...].astype(compute_dtype)               # (Cin_g, Lp)
    m = mint_ref[...].astype(compute_dtype)            # (1, Lp)

    # ---- masked Jacobi basis -> VMEM scratch (one pass over the padded image).
    # Reference semantics: the basis is computed on the *unpadded* x and the conv
    # zero-pads it, so every basis term must be exactly 0 at pad positions.  Masking
    # P0 (moved to the host-side bias) and P1 makes the 3-term recurrence keep zeros
    # there automatically.
    bas_ref[pl.ds(0, cin_g), :] = x.astype(bas_ref.dtype)          # raw x for base conv
    if order >= 1:
        t = jnp.tanh(x)                                             # EUP
        p1 = ((a - b) + (a + b + 2.0) * t) * 0.5 * m
        bas_ref[pl.ds(cin_g, cin_g), :] = p1.astype(bas_ref.dtype)
        p_km1, p_k = m, p1                                          # (1,Lp) broadcasts
        for i in range(2, order + 1):
            th_k, th_k1, th_k2 = _jacobi_thetas(i, a, b)
            p_next = (th_k * t + th_k1) * p_k - th_k2 * p_km1
            bas_ref[pl.ds(i * cin_g, cin_g), :] = p_next.astype(bas_ref.dtype)
            p_km1, p_k = p_k, p_next

    # ---- conv: one MXU matmul per (kh,kw) tap, contraction fused over (term, channel).
    # Each tap's RHS is a contiguous lane window of the flat padded image (stride=1).
    acc = bias_ref[...]                                             # (Cout_g, S) f32
    for kh in range(kH):
        for kw in range(kW):
            off = kh * dil * Wp + kw * dil
            rhs = bas_ref[:, pl.ds(off, s)].astype(mm_dtype)        # (T*Cin_g, S)
            acc = acc + jnp.dot(w_ref[kh * kW + kw], rhs,
                                preferred_element_type=jnp.float32)

    # ---- InstanceNorm2d (affine=False, biased var) + SiLU, masked to real columns.
    valid = mval_ref[...]                                           # (1, S) f32
    inv_n = 1.0 / float(n_valid)
    mean = jnp.sum(acc * valid, axis=-1, keepdims=True) * inv_n
    diff = (acc - mean) * valid
    var = jnp.sum(diff * diff, axis=-1, keepdims=True) * inv_n
    yn = (acc - mean) * lax.rsqrt(var + eps)
    sig = 0.5 * (jnp.tanh(0.5 * yn) + 1.0)                          # sigmoid via EUP tanh
    o_ref[...] = (yn * sig).astype(o_ref.dtype)


# ----------------------- weight packing (hoisted, one-time) ------------------

def prepare_kajn_weights(base_w, poly_w):
    """Pack base-conv + poly weights once, outside the forward hot path.

    Returns
      w_pack: (G, kH*kW, Cout_g, (order+1)*Cin_g) fused per-tap weights; last axis
              ordered (t, c) with t=0 the base conv (raw x) and t=1..order -> P_t.
      w_p0  : (G, Cout_g, Cin_g, kH, kW) the P_0 poly weights (folded into a bias
              inside the forward wrapper).
    """
    G, cout_g, cin_g_t, kH, kW = poly_w.shape
    cout_g_b, cin_g, kH_b, kW_b = base_w.shape
    assert (cout_g_b, kH_b, kW_b) == (cout_g, kH, kW)
    order_p1 = cin_g_t // cin_g                       # order + 1
    wp = poly_w.reshape(G, cout_g, order_p1, cin_g, kH, kW)
    w_p0 = wp[:, :, 0]
    wb = jnp.broadcast_to(base_w[None, :, None], (G, cout_g, 1, cin_g, kH, kW))
    terms = jnp.concatenate([wb, wp[:, :, 1:]], axis=2)     # (G,Cout_g,T,Cin_g,kH,kW)
    T = order_p1
    w_pack = terms.reshape(G, cout_g, T * cin_g, kH * kW)
    w_pack = jnp.moveaxis(w_pack, -1, 1)                    # (G, KK, Cout_g, T*Cin_g)
    return w_pack.astype(jnp.float32), w_p0.astype(jnp.float32)


# ---------------------------------- forward ----------------------------------

def kajn_conv2d_forward(x, w_pack, w_p0, *, groups, spline_order, kernel_size=3,
                        a=1.0, b=1.0, stride=1, padding=1, dilation=1, eps=1e-5,
                        mm_dtype=jnp.bfloat16, compute_dtype=jnp.float32,
                        interpret=False):
    # TODO(synk): stride > 1 needs strided lane windows (or an im2col fallback).
    assert stride == 1, "only stride=1 is implemented"
    B, Cin, H, W = x.shape
    kH = kW = kernel_size
    KK = kH * kW
    Cin_g = Cin // groups
    T = spline_order + 1
    G, KK_w, Cout_g, TK = w_pack.shape
    assert G == groups and KK_w == KK and TK == T * Cin_g

    if padding == 'same':
        padding = dilation * (kernel_size - 1) // 2
    elif padding == 'valid':
        padding = 0
    pad = int(padding)

    Hp, Wp = H + 2 * pad, W + 2 * pad
    Ho = Hp - dilation * (kH - 1)
    Wo = Wp - dilation * (kW - 1)
    S = Ho * Wp                                  # output lanes; (s % Wp) >= Wo = scratch
    tail = (kW - 1) * dilation
    extra_rows = -(-tail // Wp) if tail > 0 else 0
    Lp = (Hp + extra_rows) * Wp
    assert (kH - 1) * dilation * Wp + tail + S <= Lp

    stream_dtype = (jnp.bfloat16 if jnp.dtype(mm_dtype) == jnp.dtype(jnp.bfloat16)
                    else jnp.float32)

    # zero-pad + flatten (row-major); ~1.3x the traffic of reading x once.
    xp = jnp.pad(x, ((0, 0), (0, 0), (pad, pad + extra_rows), (pad, pad)))
    x_flat = xp.reshape(B, groups, Cin_g, Lp).astype(stream_dtype)

    # tiny shape-only masks (no traced deps -> constant-folded by XLA).
    posl = jnp.arange(Lp, dtype=jnp.int32)
    rowl, coll = posl // Wp, posl % Wp
    m_int1d = (((rowl >= pad) & (rowl < H + pad) &
                (coll >= pad) & (coll < W + pad)).astype(jnp.float32))      # (Lp,)
    poss = jnp.arange(S, dtype=jnp.int32)
    m_valid = ((poss % Wp) < Wo).astype(jnp.float32)[None, :]               # (1, S)

    # batch-invariant P0 contribution folded into a per-group bias (review item).
    offs = [kh * dilation * Wp + kw * dilation
            for kh in range(kH) for kw in range(kW)]
    slab_m = jnp.stack([m_int1d[o:o + S] for o in offs])                    # (KK, S)
    w_p0_sum = jnp.sum(w_p0, axis=2).reshape(groups, Cout_g, KK)
    bias = jnp.einsum('gok,ks->gos', w_p0_sum, slab_m,
                      precision=lax.Precision.HIGHEST)                      # (G,Cout_g,S)
    m_interior = m_int1d[None, :]                                           # (1, Lp)
    w_mm = w_pack.astype(mm_dtype)

    # basis scratch dtype: mm_dtype when packed-sublane stores stay aligned.
    pack = 4 // jnp.dtype(mm_dtype).itemsize
    scratch_dtype = mm_dtype if (pack == 1 or Cin_g % pack == 0) else jnp.float32

    # VMEM working-set estimate -> scoped limit (defaults 16/32 MiB are too small for
    # big spatial extents; v7x physical VMEM is 64 MiB).
    bs = jnp.dtype(stream_dtype).itemsize
    bm = jnp.dtype(mm_dtype).itemsize
    bsc = jnp.dtype(scratch_dtype).itemsize
    est = (2 * Cin_g * Lp * bs + 2 * (Lp + S) * 4 + 2 * Cout_g * S * 4
           + 2 * KK * Cout_g * T * Cin_g * bm + 2 * Cout_g * S * 4
           + T * Cin_g * Lp * bsc + 8 * Cin_g * Lp * 4 + 2 * Cout_g * S * 4)
    vmem_limit = int(min(96 * 2 ** 20, max(32 * 2 ** 20, int(1.5 * est))))
    # TODO(synk): very large Ho*Wo (working set beyond ~48 MiB on v7x) needs an
    # Ho-row-tiled two-pass InstanceNorm (accumulate sum/sumsq per tile, then normalize).

    kern = partial(_kajn_fused_kernel, order=spline_order, a=a, b=b, eps=eps,
                   kH=kH, kW=kW, dil=dilation, Wp=Wp, n_valid=Ho * Wo,
                   mm_dtype=mm_dtype, compute_dtype=compute_dtype)

    out = pl.pallas_call(
        kern,
        out_shape=jax.ShapeDtypeStruct((B, groups, Cout_g, S), jnp.float32),
        grid=(groups, B),        # inner b: per-group weight/bias blocks stay resident
        in_specs=[
            pl.BlockSpec((None, None, Cin_g, Lp), lambda gi, bi: (bi, gi, 0, 0)),
            pl.BlockSpec((1, Lp), lambda gi, bi: (0, 0)),
            pl.BlockSpec((1, S), lambda gi, bi: (0, 0)),
            pl.BlockSpec((None, Cout_g, S), lambda gi, bi: (gi, 0, 0)),
            pl.BlockSpec((None, KK, Cout_g, T * Cin_g), lambda gi, bi: (gi, 0, 0, 0)),
        ],
        out_specs=pl.BlockSpec((None, None, Cout_g, S), lambda gi, bi: (bi, gi, 0, 0)),
        scratch_shapes=[pltpu.VMEM((T * Cin_g, Lp), scratch_dtype)],
        compiler_params=pltpu.CompilerParams(
            dimension_semantics=("parallel", "parallel"),
            vmem_limit_bytes=vmem_limit),
        interpret=interpret,
    )(x_flat, m_interior, m_valid, bias, w_mm)

    # (B, G, Cout_g, Ho*Wp) -> NCHW: free reshape + slice off the Wp-Wo scratch columns.
    return out.reshape(B, groups * Cout_g, Ho, Wp)[..., :Wo]


# ----------------------------- pure-JAX reference ----------------------------

def _jacobi_ref(t, order, a, b):
    p0 = jnp.ones_like(t)
    if order == 0:
        return p0
    p1 = (a - b + (a + b + 2.0) * t) / 2.0
    polys = [p0, p1]
    for i in range(2, order + 1):
        th_k, th_k1, th_k2 = _jacobi_thetas(i, a, b)
        polys.append((th_k * t + th_k1) * polys[i - 1] - th_k2 * polys[i - 2])
    return jnp.concatenate(polys, axis=1)


def ref_forward(x, base_w, poly_w, *, groups, spline_order, a, b,
                stride=1, padding=1, dilation=1, eps=1e-5):
    Cin_g = x.shape[1] // groups
    dn = ('NCHW', 'OIHW', 'NCHW')
    padc = [(padding, padding)] * 2
    outs = []
    for g in range(groups):
        xg = x[:, g * Cin_g:(g + 1) * Cin_g]
        base = lax.conv_general_dilated(xg, base_w, (stride, stride), padc,
                                        rhs_dilation=(dilation, dilation),
                                        dimension_numbers=dn,
                                        precision=lax.Precision.HIGHEST)
        basis = _jacobi_ref(jnp.tanh(xg), spline_order, a, b)
        poly = lax.conv_general_dilated(basis, poly_w[g], (stride, stride), padc,
                                        rhs_dilation=(dilation, dilation),
                                        dimension_numbers=dn,
                                        precision=lax.Precision.HIGHEST)
        y = base + poly
        mean = y.mean(axis=(2, 3), keepdims=True)
        var = ((y - mean) ** 2).mean(axis=(2, 3), keepdims=True)
        yn = (y - mean) / jnp.sqrt(var + eps)
        outs.append(yn * jax.nn.sigmoid(yn))
    return jnp.concatenate(outs, axis=1)


# ------------------------------------ main ------------------------------------

if __name__ == "__main__":
    # Module config (ndim=2): in=4, out=8, groups=2, spline_order=3, k=3,
    # stride=1, padding=1, dilation=1, a=b=1.0, dropout=0.0, InstanceNorm2d.
    B, Cin, H, W = 2, 4, 16, 16
    Cout, groups, order, k = 8, 2, 3, 3
    a_coef = b_coef = 1.0
    Cin_g, Cout_g = Cin // groups, Cout // groups

    key = jax.random.PRNGKey(0)
    k1, k2, k3 = jax.random.split(key, 3)

    # base conv weight (shared across groups, as in ModuleList([base_conv]*groups)),
    # kaiming_uniform(nonlinearity='linear'): bound = sqrt(3 / fan_in)
    fan_in = Cin_g * k * k
    bound = math.sqrt(3.0 / fan_in)
    base_w = jax.random.uniform(k1, (Cout_g, Cin_g, k, k),
                                minval=-bound, maxval=bound, dtype=jnp.float32)

    # poly weights: normal, std = 1 / (in_channels*(order+1)*sum(ks)/len(ks)**ndim)
    std = 1.0 / (Cin * (order + 1) * (k + k) / (2 ** 2))
    poly_w = std * jax.random.normal(
        k2, (groups, Cout_g, Cin_g * (order + 1), k, k), dtype=jnp.float32)

    x = jax.random.normal(k3, (B, Cin, H, W), dtype=jnp.float32)

    # Weight packing hoisted out of the forward hot path (done once).
    w_pack, w_p0 = prepare_kajn_weights(base_w, poly_w)

    common = dict(groups=groups, spline_order=order, kernel_size=k,
                  a=a_coef, b=b_coef, stride=1, padding=1, dilation=1)
    fwd_f32 = jax.jit(partial(kajn_conv2d_forward, mm_dtype=jnp.float32, **common))
    fwd_bf16 = jax.jit(partial(kajn_conv2d_forward, mm_dtype=jnp.bfloat16, **common))

    out = jax.block_until_ready(fwd_f32(x, w_pack, w_p0))
    out_bf16 = jax.block_until_ready(fwd_bf16(x, w_pack, w_p0))

    ref = ref_forward(x, base_w, poly_w, groups=groups, spline_order=order,
                      a=a_coef, b=b_coef, padding=1)

    assert out.shape == (B, Cout, H, W), out.shape
    err = float(jnp.max(jnp.abs(out - ref)))
    assert jnp.allclose(out, ref, rtol=1e-3, atol=1e-3), err            # f32 MXU path
    err_bf16 = float(jnp.max(jnp.abs(out_bf16 - ref)))
    assert jnp.allclose(out_bf16, ref, rtol=5e-2, atol=5e-2), err_bf16  # bf16 MXU path

    # TODO(synk): dropout>0 and the nn.LayerNorm norm_class variant are not exercised
    # (module instantiated with dropout=0.0 / InstanceNorm2d).
    print("KERNEL_OK")
</pallas_src>

<mosaic_0001>
module attributes {stable_mosaic.version = 11 : i64} {
  func.func @_kajn_fused_kernel(%arg0: i32, %arg1: i32, %arg2: memref<1x1x2x342xf32, #tpu.memory_space<vmem>>, %arg3: memref<1x342xf32, #tpu.memory_space<vmem>>, %arg4: memref<1x288xf32, #tpu.memory_space<vmem>>, %arg5: memref<1x4x288xf32, #tpu.memory_space<vmem>>, %arg6: memref<1x9x4x8xf32, #tpu.memory_space<vmem>>, %arg7: memref<1x1x4x288xf32, #tpu.memory_space<vmem>>, %arg8: memref<8x342xf32, #tpu.memory_space<vmem>>) attributes {dimension_semantics = [#tpu.dimension_semantics<parallel>, #tpu.dimension_semantics<parallel>], iteration_bounds = array<i64: 2, 2>, scalar_prefetch = 0 : i64, scratch_operands = 1 : i64, tpu.core_type = #tpu.core_type<tc>, window_params = [{transform_indices = @transform_0, window_bounds = array<i64: 1, 1, 2, 342>}, {pipeline_mode = #tpu.pipeline_mode<synchronous>, transform_indices = @transform_1, window_bounds = array<i64: 1, 342>}, {pipeline_mode = #tpu.pipeline_mode<synchronous>, transform_indices = @transform_2, window_bounds = array<i64: 1, 288>}, {transform_indices = @transform_3, window_bounds = array<i64: 1, 4, 288>}, {transform_indices = @transform_4, window_bounds = array<i64: 1, 9, 4, 8>}, {transform_indices = @transform_5, window_bounds = array<i64: 1, 1, 4, 288>}]} {
    %c0 = arith.constant 0 : index
    %c0_0 = arith.constant 0 : index
    %c0_1 = arith.constant 0 : index
    %c0_2 = arith.constant 0 : index
    %0 = vector.load %arg2[%c0, %c0_0, %c0_1, %c0_2] : memref<1x1x2x342xf32, #tpu.memory_space<vmem>>, vector<1x1x2x342xf32>
    %1 = vector.shape_cast %0 : vector<1x1x2x342xf32> to vector<2x342xf32>
    %c0_3 = arith.constant 0 : index
    %c0_4 = arith.constant 0 : index
    %2 = vector.load %arg3[%c0_3, %c0_4] : memref<1x342xf32, #tpu.memory_space<vmem>>, vector<1x342xf32>
    %c0_5 = arith.constant 0 : index
    %c0_6 = arith.constant 0 : index
    %3 = vector.load %arg8[%c0_5, %c0_6] : memref<8x342xf32, #tpu.memory_space<vmem>>, vector<2x342xf32>
    tpu.vector_store %arg8[%c0_5, %c0_6], %1 {strides = array<i32>} : memref<8x342xf32, #tpu.memory_space<vmem>>, vector<2x342xf32>,
    %4 = math.tanh %1 : vector<2x342xf32>
    %cst = arith.constant 4.000000e+00 : f32
    %5 = vector.broadcast %cst : f32 to vector<2x342xf32>
    %6 = arith.mulf %5, %4 : vector<2x342xf32>
    %cst_7 = arith.constant 0.000000e+00 : f32
    %7 = vector.broadcast %cst_7 : f32 to vector<2x342xf32>
    %8 = arith.addf %7, %6 : vector<2x342xf32>
    %cst_8 = arith.constant 5.000000e-01 : f32
    %9 = vector.broadcast %cst_8 : f32 to vector<2x342xf32>
    %10 = arith.mulf %8, %9 : vector<2x342xf32>
    %11 = vector.broadcast %2 : vector<1x342xf32> to vector<2x342xf32>
    %12 = arith.mulf %10, %11 : vector<2x342xf32>
    %c2 = arith.constant 2 : index
    %c0_9 = arith.constant 0 : index
    %13 = vector.load %arg8[%c2, %c0_9] : memref<8x342xf32, #tpu.memory_space<vmem>>, vector<2x342xf32>
    tpu.vector_store %arg8[%c2, %c0_9], %12 {strides = array<i32>} : memref<8x342xf32, #tpu.memory_space<vmem>>, vector<2x342xf32>,
    %cst_10 = arith.constant 1.875000e+00 : f32
    %14 = vector.broadcast %cst_10 : f32 to vector<2x342xf32>
    %15 = arith.mulf %14, %4 : vector<2x342xf32>
    %cst_11 = arith.constant 0.000000e+00 : f32
    %16 = vector.broadcast %cst_11 : f32 to vector<2x342xf32>
    %17 = arith.addf %15, %16 : vector<2x342xf32>
    %18 = arith.mulf %17, %12 : vector<2x342xf32>
    %cst_12 = arith.constant 7.500000e-01 : f32
    %19 = vector.broadcast %cst_12 : f32 to vector<1x342xf32>
    %20 = arith.mulf %19, %2 : vector<1x342xf32>
    %21 = vector.broadcast %20 : vector<1x342xf32> to vector<2x342xf32>
    %22 = arith.subf %18, %21 : vector<2x342xf32>
    %c4 = arith.constant 4 : index
    %c0_13 = arith.constant 0 : index
    %23 = vector.load %arg8[%c4, %c0_13] : memref<8x342xf32, #tpu.memory_space<vmem>>, vector<2x342xf32>
    tpu.vector_store %arg8[%c4, %c0_13], %22 {strides = array<i32>} : memref<8x342xf32, #tpu.memory_space<vmem>>, vector<2x342xf32>,
    %cst_14 = arith.constant 1.86666667 : f32
    %24 = vector.broadcast %cst_14 : f32 to vector<2x342xf32>
    %25 = arith.mulf %24, %4 : vector<2x342xf32>
    %cst_15 = arith.constant 0.000000e+00 : f32
    %26 = vector.broadcast %cst_15 : f32 to vector<2x342xf32>
    %27 = arith.addf %25, %26 : vector<2x342xf32>
    %28 = arith.mulf %27, %22 : vector<2x342xf32>
    %cst_16 = arith.constant 8.000000e-01 : f32
    %29 = vector.broadcast %cst_16 : f32 to vector<2x342xf32>
    %30 = arith.mulf %29, %12 : vector<2x342xf32>
    %31 = arith.subf %28, %30 : vector<2x342xf32>
    %c6 = arith.constant 6 : index
    %c0_17 = arith.constant 0 : index
    %32 = vector.load %arg8[%c6, %c0_17] : memref<8x342xf32, #tpu.memory_space<vmem>>, vector<2x342xf32>
    tpu.vector_store %arg8[%c6, %c0_17], %31 {strides = array<i32>} : memref<8x342xf32, #tpu.memory_space<vmem>>, vector<2x342xf32>,
    %c0_18 = arith.constant 0 : index
    %c0_19 = arith.constant 0 : index
    %c0_20 = arith.constant 0 : index
    %33 = vector.load %arg5[%c0_18, %c0_19, %c0_20] : memref<1x4x288xf32, #tpu.memory_space<vmem>>, vector<1x4x288xf32>
    %34 = vector.shape_cast %33 : vector<1x4x288xf32> to vector<4x288xf32>
    %c0_21 = arith.constant 0 : index
    %c0_22 = arith.constant 0 : index
    %35 = vector.load %arg8[%c0_21, %c0_22] : memref<8x342xf32, #tpu.memory_space<vmem>>, vector<8x288xf32>
    %c0_23 = arith.constant 0 : index
    %c0_24 = arith.constant 0 : index
    %c0_25 = arith.constant 0 : index
    %c0_26 = arith.constant 0 : index
    %36 = vector.load %arg6[%c0_23, %c0_24, %c0_25, %c0_26] : memref<1x9x4x8xf32, #tpu.memory_space<vmem>>, vector<1x1x4x8xf32>
    %37 = vector.shape_cast %36 : vector<1x1x4x8xf32> to vector<4x8xf32>
    %cst_27 = arith.constant dense<0.000000e+00> : vector<4x288xf32>
    %38 = tpu.matmul %37, %35, %cst_27 {dimension_numbers = #tpu.dot_dimension_numbers<[1], [0], [0], [1], [0, 0, 1, 1], [], []>} : vector<4x8xf32>, vector<8x288xf32>, vector<4x288xf32> -> vector<4x288xf32>
    %39 = arith.addf %34, %38 : vector<4x288xf32>
    %c0_28 = arith.constant 0 : index
    %c1 = arith.constant 1 : index
    %40 = vector.load %arg8[%c0_28, %c1] : memref<8x342xf32, #tpu.memory_space<vmem>>, vector<8x288xf32>
    %c0_29 = arith.constant 0 : index
    %c1_30 = arith.constant 1 : index
    %c0_31 = arith.constant 0 : index
    %c0_32 = arith.constant 0 : index
    %41 = vector.load %arg6[%c0_29, %c1_30, %c0_31, %c0_32] : memref<1x9x4x8xf32, #tpu.memory_space<vmem>>, vector<1x1x4x8xf32>
    %42 = vector.shape_cast %41 : vector<1x1x4x8xf32> to vector<4x8xf32>
    %cst_33 = arith.constant dense<0.000000e+00> : vector<4x288xf32>
    %43 = tpu.matmul %42, %40, %cst_33 {dimension_numbers = #tpu.dot_dimension_numbers<[1], [0], [0], [1], [0, 0, 1, 1], [], []>} : vector<4x8xf32>, vector<8x288xf32>, vector<4x288xf32> -> vector<4x288xf32>
    %44 = arith.addf %39, %43 : vector<4x288xf32>
    %c0_34 = arith.constant 0 : index
    %c2_35 = arith.constant 2 : index
    %45 = vector.load %arg8[%c0_34, %c2_35] : memref<8x342xf32, #tpu.memory_space<vmem>>, vector<8x288xf32>
    %c0_36 = arith.constant 0 : index
    %c2_37 = arith.constant 2 : index
    %c0_38 = arith.constant 0 : index
    %c0_39 = arith.constant 0 : index
    %46 = vector.load %arg6[%c0_36, %c2_37, %c0_38, %c0_39] : memref<1x9x4x8xf32, #tpu.memory_space<vmem>>, vector<1x1x4x8xf32>
    %47 = vector.shape_cast %46 : vector<1x1x4x8xf32> to vector<4x8xf32>
    %cst_40 = arith.constant dense<0.000000e+00> : vector<4x288xf32>
    %48 = tpu.matmul %47, %45, %cst_40 {dimension_numbers = #tpu.dot_dimension_numbers<[1], [0], [0], [1], [0, 0, 1, 1], [], []>} : vector<4x8xf32>, vector<8x288xf32>, vector<4x288xf32> -> vector<4x288xf32>
    %49 = arith.addf %44, %48 : vector<4x288xf32>
    %c0_41 = arith.constant 0 : index
    %c18 = arith.constant 18 : index
    %50 = vector.load %arg8[%c0_41, %c18] : memref<8x342xf32, #tpu.memory_space<vmem>>, vector<8x288xf32>
    %c0_42 = arith.constant 0 : index
    %c3 = arith.constant 3 : index
    %c0_43 = arith.constant 0 : index
    %c0_44 = arith.constant 0 : index
    %51 = vector.load %arg6[%c0_42, %c3, %c0_43, %c0_44] : memref<1x9x4x8xf32, #tpu.memory_space<vmem>>, vector<1x1x4x8xf32>
    %52 = vector.shape_cast %51 : vector<1x1x4x8xf32> to vector<4x8xf32>
    %cst_45 = arith.constant dense<0.000000e+00> : vector<4x288xf32>
    %53 = tpu.matmul %52, %50, %cst_45 {dimension_numbers = #tpu.dot_dimension_numbers<[1], [0], [0], [1], [0, 0, 1, 1], [], []>} : vector<4x8xf32>, vector<8x288xf32>, vector<4x288xf32> -> vector<4x288xf32>
    %54 = arith.addf %49, %53 : vector<4x288xf32>
    %c0_46 = arith.constant 0 : index
    %c19 = arith.constant 19 : index
    %55 = vector.load %arg8[%c0_46, %c19] : memref<8x342xf32, #tpu.memory_space<vmem>>, vector<8x288xf32>
    %c0_47 = arith.constant 0 : index
    %c4_48 = arith.constant 4 : index
    %c0_49 = arith.constant 0 : index
    %c0_50 = arith.constant 0 : index
    %56 = vector.load %arg6[%c0_47, %c4_48, %c0_49, %c0_50] : memref<1x9x4x8xf32, #tpu.memory_space<vmem>>, vector<1x1x4x8xf32>
    %57 = vector.shape_cast %56 : vector<1x1x4x8xf32> to vector<4x8xf32>
    %cst_51 = arith.constant dense<0.000000e+00> : vector<4x288xf32>
    %58 = tpu.matmul %57, %55, %cst_51 {dimension_numbers = #tpu.dot_dimension_numbers<[1], [0], [0], [1], [0, 0, 1, 1], [], []>} : vector<4x8xf32>, vector<8x288xf32>, vector<4x288xf32> -> vector<4x288xf32>
    %59 = arith.addf %54, %58 : vector<4x288xf32>
    %c0_52 = arith.constant 0 : index
    %c20 = arith.constant 20 : index
    %60 = vector.load %arg8[%c0_52, %c20] : memref<8x342xf32, #tpu.memory_space<vmem>>, vector<8x288xf32>
    %c0_53 = arith.constant 0 : index
    %c5 = arith.constant 5 : index
    %c0_54 = arith.constant 0 : index
    %c0_55 = arith.constant 0 : index
    %61 = vector.load %arg6[%c0_53, %c5, %c0_54, %c0_55] : memref<1x9x4x8xf32, #tpu.memory_space<vmem>>, vector<1x1x4x8xf32>
    %62 = vector.shape_cast %61 : vector<1x1x4x8xf32> to vector<4x8xf32>
    %cst_56 = arith.constant dense<0.000000e+00> : vector<4x288xf32>
    %63 = tpu.matmul %62, %60, %cst_56 {dimension_numbers = #tpu.dot_dimension_numbers<[1], [0], [0], [1], [0, 0, 1, 1], [], []>} : vector<4x8xf32>, vector<8x288xf32>, vector<4x288xf32> -> vector<4x288xf32>
    %64 = arith.addf %59, %63 : vector<4x288xf32>
    %c0_57 = arith.constant 0 : index
    %c36 = arith.constant 36 : index
    %65 = vector.load %arg8[%c0_57, %c36] : memref<8x342xf32, #tpu.memory_space<vmem>>, vector<8x288xf32>
    %c0_58 = arith.constant 0 : index
    %c6_59 = arith.constant 6 : index
    %c0_60 = arith.constant 0 : index
    %c0_61 = arith.constant 0 : index
    %66 = vector.load %arg6[%c0_58, %c6_59, %c0_60, %c0_61] : memref<1x9x4x8xf32, #tpu.memory_space<vmem>>, vector<1x1x4x8xf32>
    %67 = vector.shape_cast %66 : vector<1x1x4x8xf32> to vector<4x8xf32>
    %cst_62 = arith.constant dense<0.000000e+00> : vector<4x288xf32>
    %68 = tpu.matmul %67, %65, %cst_62 {dimension_numbers = #tpu.dot_dimension_numbers<[1], [0], [0], [1], [0, 0, 1, 1], [], []>} : vector<4x8xf32>, vector<8x288xf32>, vector<4x288xf32> -> vector<4x288xf32>
    %69 = arith.addf %64, %68 : vector<4x288xf32>
    %c0_63 = arith.constant 0 : index
    %c37 = arith.constant 37 : index
    %70 = vector.load %arg8[%c0_63, %c37] : memref<8x342xf32, #tpu.memory_space<vmem>>, vector<8x288xf32>
    %c0_64 = arith.constant 0 : index
    %c7 = arith.constant 7 : index
    %c0_65 = arith.constant 0 : index
    %c0_66 = arith.constant 0 : index
    %71 = vector.load %arg6[%c0_64, %c7, %c0_65, %c0_66] : memref<1x9x4x8xf32, #tpu.memory_space<vmem>>, vector<1x1x4x8xf32>
    %72 = vector.shape_cast %71 : vector<1x1x4x8xf32> to vector<4x8xf32>
    %cst_67 = arith.constant dense<0.000000e+00> : vector<4x288xf32>
    %73 = tpu.matmul %72, %70, %cst_67 {dimension_numbers = #tpu.dot_dimension_numbers<[1], [0], [0], [1], [0, 0, 1, 1], [], []>} : vector<4x8xf32>, vector<8x288xf32>, vector<4x288xf32> -> vector<4x288xf32>
    %74 = arith.addf %69, %73 : vector<4x288xf32>
    %c0_68 = arith.constant 0 : index
    %c38 = arith.constant 38 : index
    %75 = vector.load %arg8[%c0_68, %c38] : memref<8x342xf32, #tpu.memory_space<vmem>>, vector<8x288xf32>
    %c0_69 = arith.constant 0 : index
    %c8 = arith.constant 8 : index
    %c0_70 = arith.constant 0 : index
    %c0_71 = arith.constant 0 : index
    %76 = vector.load %arg6[%c0_69, %c8, %c0_70, %c0_71] : memref<1x9x4x8xf32, #tpu.memory_space<vmem>>, vector<1x1x4x8xf32>
    %77 = vector.shape_cast %76 : vector<1x1x4x8xf32> to vector<4x8xf32>
    %cst_72 = arith.constant dense<0.000000e+00> : vector<4x288xf32>
    %78 = tpu.matmul %77, %75, %cst_72 {dimension_numbers = #tpu.dot_dimension_numbers<[1], [0], [0], [1], [0, 0, 1, 1], [], []>} : vector<4x8xf32>, vector<8x288xf32>, vector<4x288xf32> -> vector<4x288xf32>
    %79 = arith.addf %74, %78 : vector<4x288xf32>
    %c0_73 = arith.constant 0 : index
    %c0_74 = arith.constant 0 : index
    %80 = vector.load %arg4[%c0_73, %c0_74] : memref<1x288xf32, #tpu.memory_space<vmem>>, vector<1x288xf32>
    %81 = vector.broadcast %80 : vector<1x288xf32> to vector<4x288xf32>
    %82 = arith.mulf %79, %81 : vector<4x288xf32>
    %cst_75 = arith.constant dense<0.000000e+00> : vector<4xf32>
    %83 = vector.multi_reduction <add>, %82, %cst_75 [1] : vector<4x288xf32> to vector<4xf32>
    %84 = vector.shape_cast %83 : vector<4xf32> to vector<4x1xf32>
    %cst_76 = arith.constant 3.906250e-03 : f32
    %85 = vector.broadcast %cst_76 : f32 to vector<4x1xf32>
    %86 = arith.mulf %84, %85 : vector<4x1xf32>
    %87 = vector.broadcast %86 : vector<4x1xf32> to vector<4x288xf32>
    %88 = arith.subf %79, %87 : vector<4x288xf32>
    %89 = vector.broadcast %80 : vector<1x288xf32> to vector<4x288xf32>
    %90 = arith.mulf %88, %89 : vector<4x288xf32>
    %91 = arith.mulf %90, %90 : vector<4x288xf32>
    %cst_77 = arith.constant dense<0.000000e+00> : vector<4xf32>
    %92 = vector.multi_reduction <add>, %91, %cst_77 [1] : vector<4x288xf32> to vector<4xf32>
    %93 = vector.shape_cast %92 : vector<4xf32> to vector<4x1xf32>
    %cst_78 = arith.constant 3.906250e-03 : f32
    %94 = vector.broadcast %cst_78 : f32 to vector<4x1xf32>
    %95 = arith.mulf %93, %94 : vector<4x1xf32>
    %96 = vector.broadcast %86 : vector<4x1xf32> to vector<4x288xf32>
    %97 = arith.subf %79, %96 : vector<4x288xf32>
    %cst_79 = arith.constant 9.99999974E-6 : f32
    %98 = vector.broadcast %cst_79 : f32 to vector<4x1xf32>
    %99 = arith.addf %95, %98 : vector<4x1xf32>
    %100 = math.rsqrt %99 : vector<4x1xf32>
    %101 = vector.broadcast %100 : vector<4x1xf32> to vector<4x288xf32>
    %102 = arith.mulf %97, %101 : vector<4x288xf32>
    %cst_80 = arith.constant 5.000000e-01 : f32
    %103 = vector.broadcast %cst_80 : f32 to vector<4x288xf32>
    %104 = arith.mulf %103, %102 : vector<4x288xf32>
    %105 = math.tanh %104 : vector<4x288xf32>
    %cst_81 = arith.constant 1.000000e+00 : f32
    %106 = vector.broadcast %cst_81 : f32 to vector<4x288xf32>
    %107 = arith.addf %105, %106 : vector<4x288xf32>
    %cst_82 = arith.constant 5.000000e-01 : f32
    %108 = vector.broadcast %cst_82 : f32 to vector<4x288xf32>
    %109 = arith.mulf %108, %107 : vector<4x288xf32>
    %110 = arith.mulf %102, %109 : vector<4x288xf32>
    %c0_83 = arith.constant 0 : index
    %c0_84 = arith.constant 0 : index
    %c0_85 = arith.constant 0 : index
    %c0_86 = arith.constant 0 : index
    %111 = vector.load %arg7[%c0_83, %c0_84, %c0_85, %c0_86] : memref<1x1x4x288xf32, #tpu.memory_space<vmem>>, vector<1x1x4x288xf32>
    %112 = vector.shape_cast %111 : vector<1x1x4x288xf32> to vector<4x288xf32>
    %113 = vector.shape_cast %110 : vector<4x288xf32> to vector<1x1x4x288xf32>
    tpu.vector_store %arg7[%c0_83, %c0_84, %c0_85, %c0_86], %113 {strides = array<i32>} : memref<1x1x4x288xf32, #tpu.memory_space<vmem>>, vector<1x1x4x288xf32>,
    return
  }
  func.func @transform_0(%arg0: i32, %arg1: i32) -> (i32, i32, i32, i32) {
    %c0_i32 = arith.constant 0 : i32
    %c0_i32_0 = arith.constant 0 : i32
    %c0_i32_1 = arith.constant 0 : i32
    return %arg1, %arg0, %c0_i32, %c0_i32_0 : i32, i32, i32, i32
  }
  func.func @transform_1(%arg0: i32, %arg1: i32) -> (i32, i32) {
    %c0_i32 = arith.constant 0 : i32
    %c0_i32_0 = arith.constant 0 : i32
    %c0_i32_1 = arith.constant 0 : i32
    return %c0_i32, %c0_i32_0 : i32, i32
  }
  func.func @transform_2(%arg0: i32, %arg1: i32) -> (i32, i32) {
    %c0_i32 = arith.constant 0 : i32
    %c0_i32_0 = arith.constant 0 : i32
    %c0_i32_1 = arith.constant 0 : i32
    return %c0_i32, %c0_i32_0 : i32, i32
  }
  func.func @transform_3(%arg0: i32, %arg1: i32) -> (i32, i32, i32) {
    %c0_i32 = arith.constant 0 : i32
    %c0_i32_0 = arith.constant 0 : i32
    %c0_i32_1 = arith.constant 0 : i32
    return %arg0, %c0_i32, %c0_i32_0 : i32, i32, i32
  }
  func.func @transform_4(%arg0: i32, %arg1: i32) -> (i32, i32, i32, i32) {
    %c0_i32 = arith.constant 0 : i32
    %c0_i32_0 = arith.constant 0 : i32
    %c0_i32_1 = arith.constant 0 : i32
    %c0_i32_2 = arith.constant 0 : i32
    return %arg0, %c0_i32, %c0_i32_0, %c0_i32_1 : i32, i32, i32, i32
  }
  func.func @transform_5(%arg0: i32, %arg1: i32) -> (i32, i32, i32, i32) {
    %c0_i32 = arith.constant 0 : i32
    %c0_i32_0 = arith.constant 0 : i32
    %c0_i32_1 = arith.constant 0 : i32
    return %arg1, %arg0, %c0_i32, %c0_i32_0 : i32, i32, i32, i32
  }
}

</mosaic_0001>

<bundles_post_ra>
// kernel: kajn_conv2d_forward.1
= control target key start
LH: loop header
LB: loop body
LE: loop exit
PB: predicated region body
PF: predicated region fallthrough
CT: control target
= control target key end

     0   :  { %s2445_s18 = smov 0   ;;  %s2447_s19 = smov 0   ;;  %s2633_s0 = inlined_call_operand.vmem [shape: f32[2,2,2,342], index: 0, kind: input, shape index: {}]   ;;  %s2634_s1 = inlined_call_operand.vmem [shape: f32[1,342], index: 1, kind: input, shape index: {}]   ;;  %s2635_s2 = inlined_call_operand.vmem [shape: f32[1,288], index: 2, kind: input, shape index: {}]   ;;  %s2636_s3 = inlined_call_operand.vmem [shape: f32[2,4,288], index: 3, kind: input, shape index: {}]   ;;  %s2637_s4 = inlined_call_operand.vmem [shape: f32[2,9,4,8], index: 4, kind: input, shape index: {}]   ;;  %s2638_s5 = inlined_call_operand.vmem [shape: f32[2,2,4,288], index: 5, kind: output, shape index: {}]  }
   0x1   :  { %s2449_s20 = smov 0   ;;  %s2451_s21 = smov 0  }
   0x2   :  { %s2453_s22 = smov 0  }
   0x3 LB: > { %s24_s23 = sadd.s32 1, %s2393_s20  ;;  %s27_s24 = sadd.s32 1, %s2397_s21  ;;  %s2401_s22 = sphi %s2453_s22, %s15_s22   ;;  %s2397_s21 = sphi %s2451_s21, %s2642_s21   ;;  %s2393_s20 = sphi %s2449_s20, %s2641_s20   ;;  %s2389_s19 = sphi %s2447_s19, %s2640_s19   ;;  %s2385_s18 = sphi %s2445_s18, %s2639_s18  }
   0x4   : > { %p25_p0 = scmp.ge.s32.totalorder %s24_s23, 2  ;;  %p2199_p1 = scmp.ge.s32.totalorder %s2401_s22, 1 }
   0x5   : > { %p227_p2 = scmp.lt.s32.totalorder %s2401_s22, 5 }
   0x6   : > { %s2644_s23 = smov (%p25_p0, %s24_s23), 0  ;;  %s2646_s24 = smov (!%p25_p0, %s27_s24), %s2397_s21 }
   0x7   : > { %p228_p3 = pnand %p2199_p1, %p227_p2  ;;  %p29_p4 = scmp.ge.s32.totalorder %s2646_s24, 2 }
   0x8   : > { %p273_p5 = scmp.lt.s32.totalorder (!%p228_p3), %s2385_s18, 1  ;;  %p275_p6 = scmp.lt.s32.totalorder (!%p228_p3), %s2389_s19, 1 }
   0x9   : > { %s2648_s24 = smov (%p29_p4, %s2646_s24), 0  ;;  %231 = sbr.rel (%p228_p3) target bundleno = 769 (0x301), region = 40 }
   0xa   : > { %s2406_s13 = smov (!%p228_p3), 126   ;;  %s2407_s14 = smov (!%p228_p3), 127  }
   0xb   : > { %s2408_s15 = smov (!%p228_p3), 109   ;;  %s2409_s16 = smov (!%p228_p3), 110  }
   0xc   : > { %s2410_s17 = smov (!%p228_p3), 108  }
   0xe   : > { %v2403_v0 = vmov 1983009808   ;;  %v308_v2 = vlaneseq  ;;  %s2650_s18 = smov (!%p273_p5, %s2385_s18), 1  ;;  %s2652_s19 = smov (!%p275_p6, %s2389_s19), 1  ;;  %v302_v9 = vld [vmem:[%s2634_s1] sm:$0x7] }
   0xf   : > { %v306_v1 = vunpack.c.l.s4 %v2403_v0  ;;  %s2300_s25 = smul.u32 6, %s2650_s18  ;;  %v389_v13 = vmul.f32 0.75, %v302_v9  ;;  %vm325_vm0 = vcmask 697344   ;;  %vm384_vm1 = vcmask 699394   ;;  %s2411_s18 = smov 92  }
  0x10   : > { %s2299_s26 = smul.u32 3, %s2652_s19  ;;  %v2478_v4 = vshrl.u32 %v308_v2, 7  ;;  %vm444_vm2 = vcmask 701444   ;;  %vm474_vm3 = vcmask 703494   ;;  %v2404_v52 = vmov 0.0  }
  0x11   : > { %v307_v3 = vunpack.c.0.s8 %v306_v1  ;;  %2254 = vmatprep.subr.mxu1 %v2404_v52  ;;  %550 = vmatprep.mubr.f32.mxu0 %v2404_v52  ;;  %s2302_s9 = smul.u32 36, %s2652_s19  ;;  %vm2405_vm4 = vmmov 0   ;;  %vm482_vm5 = vcmask 64512   ;;  %vm647_vm6 = vcmask 1039360  }
  0x12   : > { %s2480_s27 = sadd.s32 %s2300_s25, %s2299_s26  ;;  %v2490_v6 = vsub.s32 0, %v2478_v4  ;;  %v2493_v7 = vsub.s32 1, %v2478_v4  ;;  %v2500_v12 = vsub.s32 2, %v2478_v4  ;;  %2256 = vmatprep.mubr.msk.f32.mxu1 %vm2405_vm4, %v2404_v52  ;;  %s2412_s25 = smov 91   ;;  %vm817_vm7 = vcmask 1031168  }
  0x13   : > { %s2200_s28 = sshll.u32 %s2480_s27, 1  ;;  %v2487_v5 = vsub.s32 %v307_v3, %v2478_v4  ;;  %s2527_s12 = scalar_lea.vmem %s2637_s4, %s2302_s9  ;;  %vm987_vm8 = vcmask 900096   ;;  %vm1157_vm9 = vcmask 891904   ;;  %vm1327_vm10 = vcmask 883712  }
  0x14   : > { %s281_s6 = scalar_lea.vmem %s2633_s0, %s2200_s28  ;;  %v335_v15 = vrot.slane %v302_v9, %v2490_v6  ;;  %v339_v16 = vrot.slane %v302_v9, %v2493_v7  ;;  %v343_v18 = vrot.slane %v302_v9, %v2500_v12  ;;  %v394_v20 = vrot.slane %v389_v13, %v2490_v6  ;;  %v481_v57 = vld [vmem:[%s2527_s12] sm:$0xf]  ;;  %s2413_s26 = smov 90   ;;  %v2210_v2 = vld [vmem:[%s2527_s12 + $0x4] sm:$0xf] }
  0x15   : > { %v301_v8 = vld [vmem:[%s281_s6] sm:$0x3f]  ;;  %v398_v21 = vrot.slane %v389_v13, %v2493_v7  ;;  %v402_v24 = vrot.slane %v389_v13, %v2500_v12  ;;  %v2213_v9 = vld [vmem:[%s2527_s12 + $0x8] sm:$0xf]  ;;  %vm1497_vm11 = vcmask 752640   ;;  %vm1667_vm12 = vcmask 744448  }
  0x16   : > { %v311_v10 = vrot.slane %v301_v8, %v2487_v5  ;;  %2355 = vtanh.f32 %v301_v8  ;;  %2204 = vst.sshfl [vmem:[#allocation2] sm:$0x3 pattern:$0x76325410] %v301_v8  ;;  %v304_v11 = vcombine.high %v301_v8, %v301_v8  ;;  %v344_v19 = vcombine.low %v335_v15, %v339_v16  ;;  %s2301_s28 = smul.u32 12, %s2652_s19  ;;  %s2203_s8 = sshll.u32 %s2480_s27, 2 }
  0x17   : > { %v358_v23 = vrot.slane %v343_v18, %v2487_v5  ;;  %v403_v25 = vcombine.low %v394_v20, %v398_v21  ;;  %v417_v30 = vrot.slane %v402_v24, %v2487_v5  ;;  %vm1837_vm13 = vcmask 736256   ;;  %s300_s11 = scalar_lea.vmem %s2638_s5, %s2203_s8 }
  0x18   : > { %v319_v14 = vcombine.high %v311_v10, %v311_v10  ;;  %v318_v17 = vrot.slane %v304_v11, %v2487_v5  ;;  %v351_v22 = vrot.slane %v344_v19, %v2487_v5  ;;  %s286_s6 = scalar_lea.vmem %s2636_s3, %s2301_s28  ;;  %vm2015_vm14 = vcmask 1043456  }
  0x19   : > { %v410_v29 = vrot.slane %v403_v25, %v2487_v5  ;;  %vm2019_vm15 = vcmask 257024  }
  0x1a   : > { %324 = vst [vmem:[#allocation2 + $0x8] sm:$0x3] %v319_v14  ;;  %326 = vst.msk [vmem:[#allocation2 + $0x10] sm:$0x3] %vm325_vm0, %v318_v17  ;;  %v359_v28 = vcombine.low %v351_v22, %v358_v23  ;;  %v2216_v17 = vld [vmem:[%s2527_s12 + $0xc] sm:$0xf] }
  0x1b   : > { %v418_v34 = vcombine.low %v410_v29, %v417_v30  ;;  %v2219_v22 = vld [vmem:[%s2527_s12 + $0x10] sm:$0xf] }
  0x23   : > { %v2356_v26 = vpop.eup %2355 }
  0x24   : > { %v328_v27 = vmul.f32 4.0, %v2356_v26  ;;  %v386_v32 = vmul.f32 1.875, %v2356_v26  ;;  %v446_v37 = vmul.f32 1.8666667, %v2356_v26 }
  0x26   : > { %v330_v31 = vmul.f32 0.5, %v328_v27  ;;  %v2222_v27 = vld [vmem:[%s2527_s12 + $0x14] sm:$0xf] }
  0x28   : > { %v361_v33 = vmul.f32 %v359_v28, %v330_v31 }
  0x2a   : > { %v363_v35 = vcombine.low %v361_v33, %v361_v33  ;;  %v388_v36 = vmul.f32 %v386_v32, %v361_v33  ;;  %v377_v38 = vrot.slane %v361_v33, %v2487_v5  ;;  %v449_v41 = vmul.f32 0.8, %v361_v33  ;;  %v2225_v32 = vld [vmem:[%s2527_s12 + $0x18] sm:$0xf] }
  0x2c   : > { %v370_v39 = vrot.slane %v363_v35, %v2487_v5  ;;  %v420_v40 = vsub.f32 %v388_v36, %v418_v34  ;;  %2205 = vst.sshfl [vmem:[#allocation2] sm:$0x30 pattern:$0x76325410] %v363_v35  ;;  %385 = vst.msk [vmem:[#allocation2 + $0x10] sm:$0xc] %vm384_vm1, %v377_v38 }
  0x2e   : > { %v378_v42 = vcombine.high %v370_v39, %v370_v39  ;;  %2206 = vst.sshfl [vmem:[#allocation2 + $0x8] sm:$0xc pattern:$0x76325410] %v420_v40  ;;  %v448_v43 = vmul.f32 %v446_v37, %v420_v40  ;;  %v422_v44 = vcombine.high %v420_v40, %v420_v40  ;;  %v429_v45 = vrot.slane %v420_v40, %v2487_v5  ;;  %v2228_v39 = vld [vmem:[%s2527_s12 + $0x1c] sm:$0xf] }
  0x30   : > { %383 = vst [vmem:[#allocation2 + $0x8] sm:$0xc] %v378_v42  ;;  %v450_v46 = vsub.f32 %v448_v43, %v449_v41  ;;  %v436_v47 = vrot.slane %v422_v44, %v2487_v5  ;;  %v437_v48 = vcombine.low %v429_v45, %v429_v45  ;;  %v2231_v43 = vld [vmem:[%s2527_s12 + $0x20] sm:$0xf] }
  0x32   : > { %v452_v49 = vcombine.low %v450_v46, %v450_v46  ;;  %v438_v50 = vcombine.low %v436_v47, %v436_v47  ;;  %v466_v51 = vrot.slane %v450_v46, %v2487_v5  ;;  %442 = vst [vmem:[#allocation2] sm:$0x30] %v437_v48 }
  0x34   : > { %2207 = vst.sshfl [vmem:[#allocation2 + $0x8] sm:$0xc0 pattern:$0x76325410] %v452_v49  ;;  %445 = vst.msk [vmem:[#allocation2 + $0x10] sm:$0x30] %vm444_vm2, %v438_v50  ;;  %v468_v53 = vcombine.low %v466_v51, %v466_v51  ;;  %v459_v54 = vrot.slane %v452_v49, %v2487_v5 }
  0x36   : > { %475 = vst.msk [vmem:[#allocation2 + $0x10] sm:$0xc0] %vm474_vm3, %v468_v53  ;;  %v467_v55 = vcombine.low %v459_v54, %v459_v54 }
  0x38   : > { %472 = vst [vmem:[#allocation2] sm:$0xc0] %v467_v55 }
  0x3b   : > { %v804_v56 = vld [vmem:[#allocation2 + $0x8] sm:$0xff] }
  0x3c   : > { %813 = vrot.lane.b32.xlu1 %v804_v56, %s2406_s13  ;;  %643 = vrot.lane.b32.xlu0 %v804_v56, %s2407_s14 }
  0x3d   : > { %v975_v58 = vld [vmem:[#allocation2 + $0x10] sm:$0xff]  ;;  %516 = vmatprep.subr.mxu0 %v804_v56 }
  0x3e   : > { %2255 = vmatpush3.msra.mxu1 %v975_v58 }
  0x3f   : > { %2257 = vmatmul.mubr.msk.f32.vlgmr.msra.gmra.mxu1 %vm482_vm5, %v481_v57  ;;  %2259 = vmatprep.subr.mxu1 %v2404_v52  ;;  %v633_v59 = vld [vmem:[#allocation2] sm:$0xff] }
  0x40   : > { %1153 = vrot.lane.b32.xlu1 %v804_v56, %s2408_s15  ;;  %983 = vrot.lane.b32.xlu0 %v804_v56, %s2409_s16 }
  0x41   : > { %517 = vmatpush1.msra.mxu0 %v633_v59  ;;  %2261 = vmatprep.mubr.msk.f32.mxu1 %vm2405_vm4, %v2404_v52 }
  0x42   : > { %2208 = vmatmul.mubr.msk.f32.vlgmr.msra.gmra.mxu0 %vm482_vm5, %v481_v57 }
  0x43   : > { %720 = vmatprep.mubr.f32.mxu0 %v2404_v52 }
  0x44   : > { %1323 = vrot.lane.b32.xlu0 %v804_v56, %s2410_s17  ;;  %985 = vrot.lane.b32.xlu1 %v975_v58, %s2409_s16 }
  0x48   : > { %1325 = vrot.lane.b32.xlu1 %v975_v58, %s2410_s17  ;;  %645 = vrot.lane.b32.xlu0 %v975_v58, %s2407_s14 }
  0x4c   : > { %641 = vrot.lane.b32.xlu1 %v633_v59, %s2407_s14  ;;  %815 = vrot.lane.b32.xlu0 %v975_v58, %s2406_s13 }
  0x50   : > { %811 = vrot.lane.b32.xlu1 %v633_v59, %s2406_s13  ;;  %1155 = vrot.lane.b32.xlu0 %v975_v58, %s2408_s15 }
  0x54   : > { %1493 = vrot.lane.b32.xlu1 %v804_v56, %s2411_s18  ;;  %981 = vrot.lane.b32.xlu0 %v633_v59, %s2409_s16 }
  0x58   : > { %1151 = vrot.lane.b32.xlu1 %v633_v59, %s2408_s15  ;;  %1495 = vrot.lane.b32.xlu0 %v975_v58, %s2411_s18 }
  0x5c   : > { %1665 = vrot.lane.b32.xlu1 %v975_v58, %s2412_s25  ;;  %1321 = vrot.lane.b32.xlu0 %v633_v59, %s2410_s17 }
  0x60   : > { %1491 = vrot.lane.b32.xlu1 %v633_v59, %s2411_s18  ;;  %1663 = vrot.lane.b32.xlu0 %v804_v56, %s2412_s25 }
  0x64   : > { %1833 = vrot.lane.b32.xlu1 %v804_v56, %s2413_s26  ;;  %1661 = vrot.lane.b32.xlu0 %v633_v59, %s2412_s25  ;;  %v477_v56 = vld [vmem:[%s286_s6 + $0x8] sm:$0xf] }
  0x68   : > { %1831 = vrot.lane.b32.xlu1 %v633_v59, %s2413_s26  ;;  %1835 = vrot.lane.b32.xlu0 %v975_v58, %s2413_s26 }
  0xae   : > { %v814_v60 = vpop.permute.xlu1 %813  ;;  %v644_v61 = vpop.permute.xlu0 %643 }
  0xb2   : > { %v1154_v62 = vpop.permute.xlu1 %1153  ;;  %v984_v63 = vpop.permute.xlu0 %983 }
  0xb6   : > { %v2536_v0 = vpop.permute.xlu0 %1323  ;;  %v986_v1 = vpop.permute.xlu1 %985 }
  0xb7   : > { %v989_v19 = vsel %vm987_vm8, %v984_v63, %v986_v1 }
  0xba   : > { %v1326_v3 = vpop.permute.xlu1 %1325  ;;  %v646_v5 = vpop.permute.xlu0 %645 }
  0xbb   : > { %2260 = vmatpush3.msra.mxu1 %v646_v5  ;;  %v649_v8 = vsel %vm647_vm6, %v644_v61, %v646_v5  ;;  %v1329_v29 = vsel %vm1327_vm10, %v2536_v0, %v1326_v3 }
  0xbc   : > { %686 = vmatprep.subr.mxu0 %v649_v8  ;;  %2262 = vmatmul.mubr.msk.f32.vlgmr.msra.gmra.mxu1 %vm482_vm5, %v2210_v2 }
  0xbd   : > { %2264 = vmatprep.subr.mxu1 %v2404_v52  ;;  %2266 = vmatprep.mubr.msk.f32.mxu1 %vm2405_vm4, %v2404_v52 }
  0xbe   : > { %v642_v10 = vpop.permute.xlu1 %641  ;;  %v816_v11 = vpop.permute.xlu0 %815 }
  0xbf   : > { %v648_v13 = vsel %vm647_vm6, %v642_v10, %v644_v61  ;;  %2265 = vmatpush3.msra.mxu1 %v816_v11  ;;  %v819_v14 = vsel %vm817_vm7, %v814_v60, %v816_v11 }
  0xc0   : > { %687 = vmatpush1.msra.mxu0 %v648_v13  ;;  %2267 = vmatmul.mubr.msk.f32.vlgmr.msra.gmra.mxu1 %vm482_vm5, %v2213_v9 }
  0xc1   : > { %2269 = vmatprep.subr.mxu1 %v2404_v52  ;;  %2211 = vmatmul.mubr.msk.f32.vlgmr.msra.gmra.mxu0 %vm482_vm5, %v2210_v2 }
  0xc2   : > { %856 = vmatprep.subr.mxu0 %v819_v14  ;;  %2270 = vmatpush3.msra.mxu1 %v986_v1  ;;  %v812_v15 = vpop.permute.xlu1 %811  ;;  %v1156_v16 = vpop.permute.xlu0 %1155 }
  0xc3   : > { %v818_v18 = vsel %vm817_vm7, %v812_v15, %v814_v60  ;;  %2271 = vmatprep.mubr.msk.f32.mxu1 %vm2405_vm4, %v2404_v52  ;;  %2274 = vmatprep.subr.mxu1 %v2404_v52  ;;  %v1159_v24 = vsel %vm1157_vm9, %v1154_v62, %v1156_v16  ;;  %v476_v15 = vld [vmem:[%s286_s6] sm:$0xff] }
  0xc4   : > { %857 = vmatpush1.msra.mxu0 %v818_v18  ;;  %890 = vmatprep.mubr.f32.mxu0 %v2404_v52 }
  0xc5   : > { %2272 = vmatmul.mubr.msk.f32.vlgmr.msra.gmra.mxu1 %vm482_vm5, %v2216_v17  ;;  %2214 = vmatmul.mubr.msk.f32.vlgmr.msra.gmra.mxu0 %vm482_vm5, %v2213_v9 }
  0xc6   : > { %2275 = vmatpush3.msra.mxu1 %v1156_v16  ;;  %1026 = vmatprep.subr.mxu0 %v989_v19  ;;  %v1494_v20 = vpop.permute.xlu1 %1493  ;;  %v982_v21 = vpop.permute.xlu0 %981 }
  0xc7   : > { %v988_v23 = vsel %vm987_vm8, %v982_v21, %v984_v63  ;;  %2276 = vmatprep.mubr.msk.f32.mxu1 %vm2405_vm4, %v2404_v52  ;;  %2279 = vmatprep.subr.mxu1 %v2404_v52 }
  0xc8   : > { %1027 = vmatpush1.msra.mxu0 %v988_v23  ;;  %1060 = vmatprep.mubr.f32.mxu0 %v2404_v52 }
  0xc9   : > { %2277 = vmatmul.mubr.msk.f32.vlgmr.msra.gmra.mxu1 %vm482_vm5, %v2219_v22  ;;  %2217 = vmatmul.mubr.msk.f32.vlgmr.msra.gmra.mxu0 %vm482_vm5, %v2216_v17 }
  0xca   : > { %2280 = vmatpush3.msra.mxu1 %v1326_v3  ;;  %1196 = vmatprep.subr.mxu0 %v1159_v24  ;;  %v1152_v25 = vpop.permute.xlu1 %1151  ;;  %v1496_v26 = vpop.permute.xlu0 %1495 }
  0xcb   : > { %v1158_v28 = vsel %vm1157_vm9, %v1152_v25, %v1154_v62  ;;  %2281 = vmatprep.mubr.msk.f32.mxu1 %vm2405_vm4, %v2404_v52  ;;  %2284 = vmatprep.subr.mxu1 %v2404_v52  ;;  %v1499_v34 = vsel %vm1497_vm11, %v1494_v20, %v1496_v26 }
  0xcc   : > { %1197 = vmatpush1.msra.mxu0 %v1158_v28  ;;  %1230 = vmatprep.mubr.f32.mxu0 %v2404_v52 }
  0xcd   : > { %2282 = vmatmul.mubr.msk.f32.vlgmr.msra.gmra.mxu1 %vm482_vm5, %v2222_v27  ;;  %2220 = vmatmul.mubr.msk.f32.vlgmr.msra.gmra.mxu0 %vm482_vm5, %v2219_v22 }
  0xce   : > { %2285 = vmatpush3.msra.mxu1 %v1496_v26  ;;  %1366 = vmatprep.subr.mxu0 %v1329_v29  ;;  %v1666_v30 = vpop.permute.xlu1 %1665  ;;  %v1322_v31 = vpop.permute.xlu0 %1321 }
  0xcf   : > { %v1328_v33 = vsel %vm1327_vm10, %v1322_v31, %v2536_v0  ;;  %2286 = vmatprep.mubr.msk.f32.mxu1 %vm2405_vm4, %v2404_v52  ;;  %2289 = vmatprep.subr.mxu1 %v2404_v52 }
  0xd0   : > { %1367 = vmatpush1.msra.mxu0 %v1328_v33  ;;  %1400 = vmatprep.mubr.f32.mxu0 %v2404_v52 }
  0xd1   : > { %2287 = vmatmul.mubr.msk.f32.vlgmr.msra.gmra.mxu1 %vm482_vm5, %v2225_v32  ;;  %2223 = vmatmul.mubr.msk.f32.vlgmr.msra.gmra.mxu0 %vm482_vm5, %v2222_v27 }
  0xd2   : > { %2290 = vmatpush3.msra.mxu1 %v1666_v30  ;;  %1536 = vmatprep.subr.mxu0 %v1499_v34  ;;  %v1492_v35 = vpop.permute.xlu1 %1491  ;;  %v1664_v36 = vpop.permute.xlu0 %1663 }
  0xd3   : > { %v1498_v37 = vsel %vm1497_vm11, %v1492_v35, %v1494_v20  ;;  %1570 = vmatprep.mubr.f32.mxu0 %v2404_v52  ;;  %v1669_v38 = vsel %vm1667_vm12, %v1664_v36, %v1666_v30  ;;  %2291 = vmatprep.mubr.msk.f32.mxu1 %vm2405_vm4, %v2404_v52 }
  0xd4   : > { %1537 = vmatpush1.msra.mxu0 %v1498_v37  ;;  %2294 = vmatprep.subr.mxu1 %v2404_v52 }
  0xd5   : > { %2226 = vmatmul.mubr.msk.f32.vlgmr.msra.gmra.mxu0 %vm482_vm5, %v2225_v32  ;;  %1706 = vmatprep.subr.mxu0 %v1669_v38 }
  0xd6   : > { %v1834_v40 = vpop.permute.xlu1 %1833  ;;  %v1662_v41 = vpop.permute.xlu0 %1661  ;;  %2292 = vmatmul.mubr.msk.f32.vlgmr.msra.gmra.mxu1 %vm482_vm5, %v2228_v39  ;;  %1740 = vmatprep.mubr.f32.mxu0 %v2404_v52 }
  0xd7   : > { %v1668_v42 = vsel %vm1667_vm12, %v1662_v41, %v1664_v36  ;;  %2296 = vmatprep.mubr.msk.f32.mxu1 %vm2405_vm4, %v2404_v52 }
  0xd8   : > { %1707 = vmatpush1.msra.mxu0 %v1668_v42 }
  0xd9   : > { %2229 = vmatmul.mubr.msk.f32.vlgmr.msra.gmra.mxu0 %vm482_vm5, %v2228_v39 }
  0xda   : > { %v1832_v44 = vpop.permute.xlu1 %1831  ;;  %v1836_v45 = vpop.permute.xlu0 %1835  ;;  %1910 = vmatprep.mubr.f32.mxu0 %v2404_v52 }
  0xdb   : > { %v1838_v46 = vsel %vm1837_vm13, %v1832_v44, %v1834_v40  ;;  %2295 = vmatpush3.msra.mxu1 %v1836_v45  ;;  %v1839_v47 = vsel %vm1837_vm13, %v1834_v40, %v1836_v45  ;;  %v1993_v40 = vld [vmem:[%s2635_s2] sm:$0x7] }
  0xdc   : > { %1876 = vmatprep.subr.mxu0 %v1839_v47  ;;  %2297 = vmatmul.mubr.msk.f32.vlgmr.msra.gmra.mxu1 %vm482_vm5, %v2231_v43  ;;  %v1998_v42 = vrot.slane %v1993_v40, %v2490_v6 }
  0xdd   : > { %1877 = vmatpush1.msra.mxu0 %v1838_v46  ;;  %v2002_v46 = vrot.slane %v1993_v40, %v2493_v7 }
  0xde   : > { %2232 = vmatmul.mubr.msk.f32.vlgmr.msra.gmra.mxu0 %vm482_vm5, %v2231_v43 }
  0xff   : > { %v623_v48 = vpop.f32.mrf.mxu1 }
 0x100   : > { %v632_v59 = vadd.f32 %v623_v48, %v477_v56  ;;  %v2006_v56 = vrot.slane %v1993_v40, %v2500_v12 }
 0x101   : > { %v2258_v49 = vpop.f32.mrf.mxu1 }
 0x102   : > { %v552_v50 = vpop.f32.mrf.mxu0 }
 0x104   : > { %v554_v53 = vpop.f32.mrf.mxu0 }
 0x105   : > { %v629_v11 = vcombine.low %v552_v50, %v554_v53 }
 0x107   : > { %v631_v20 = vadd.f32 %v629_v11, %v476_v15 }
 0x17c   : > { %v793_v51 = vpop.f32.mrf.mxu1 }
 0x17d   : > { %v802_v0 = vadd.f32 %v793_v51, %v632_v59 }
 0x17e   : > { %v2263_v54 = vpop.f32.mrf.mxu1 }
 0x180   : > { %v963_v55 = vpop.f32.mrf.mxu1 }
 0x181   : > { %v722_v52 = vpop.f32.mrf.mxu0  ;;  %v972_v8 = vadd.f32 %v963_v55, %v802_v0  ;;  %v2008_v55 = vcombine.low %v1998_v42, %v2002_v46  ;;  %v2414_v0 = vmov 839922192  }
 0x182   : > { %v2268_v57 = vpop.f32.mrf.mxu1 }
 0x183   : > { %v724_v58 = vpop.f32.mrf.mxu0 }
 0x184   : > { %v799_v16 = vcombine.low %v722_v52, %v724_v58 }
 0x185   : > { %v892_v60 = vpop.f32.mrf.mxu0  ;;  %v1133_v61 = vpop.f32.mrf.mxu1 }
 0x186   : > { %v1142_v17 = vadd.f32 %v1133_v61, %v972_v8  ;;  %v801_v24 = vadd.f32 %v799_v16, %v631_v20 }
 0x187   : > { %v894_v62 = vpop.f32.mrf.mxu0  ;;  %v2273_v63 = vpop.f32.mrf.mxu1 }
 0x188   : > { %v969_v21 = vcombine.low %v892_v60, %v894_v62 }
 0x189   : > { %v1062_v1 = vpop.f32.mrf.mxu0  ;;  %v1303_v2 = vpop.f32.mrf.mxu1 }
 0x18a   : > { %v1312_v26 = vadd.f32 %v1303_v2, %v1142_v17  ;;  %v971_v29 = vadd.f32 %v969_v21, %v801_v24 }
 0x18b   : > { %v1064_v3 = vpop.f32.mrf.mxu0  ;;  %v2278_v5 = vpop.f32.mrf.mxu1 }
 0x18c   : > { %v1139_v25 = vcombine.low %v1062_v1, %v1064_v3  ;;  %v2027_v1 = vunpack.c.l.s4 %v2414_v0 }
 0x18d   : > { %v1232_v9 = vpop.f32.mrf.mxu0  ;;  %v1473_v10 = vpop.f32.mrf.mxu1 }
 0x18e   : > { %v1141_v33 = vadd.f32 %v1139_v25, %v971_v29  ;;  %v1482_v34 = vadd.f32 %v1473_v10, %v1312_v26  ;;  %v2028_v2 = vunpack.c.0.s8 %v2027_v1 }
 0x18f   : > { %v1234_v13 = vpop.f32.mrf.mxu0  ;;  %v2283_v14 = vpop.f32.mrf.mxu1 }
 0x190   : > { %v1309_v30 = vcombine.low %v1232_v9, %v1234_v13  ;;  %v2031_v12 = vsub.s32 %v2028_v2, %v2478_v4 }
 0x191   : > { %v1402_v18 = vpop.f32.mrf.mxu0  ;;  %v1643_v19 = vpop.f32.mrf.mxu1 }
 0x192   : > { %v1311_v37 = vadd.f32 %v1309_v30, %v1141_v33  ;;  %v1652_v44 = vadd.f32 %v1643_v19, %v1482_v34 }
 0x193   : > { %v1404_v22 = vpop.f32.mrf.mxu0  ;;  %v2288_v23 = vpop.f32.mrf.mxu1 }
 0x194   : > { %v1479_v35 = vcombine.low %v1402_v18, %v1404_v22 }
 0x195   : > { %v1572_v27 = vpop.f32.mrf.mxu0 }
 0x196   : > { %v1813_v28 = vpop.f32.mrf.mxu1  ;;  %v1481_v43 = vadd.f32 %v1479_v35, %v1311_v37 }
 0x197   : > { %v1574_v31 = vpop.f32.mrf.mxu0  ;;  %v1822_v51 = vadd.f32 %v1813_v28, %v1652_v44 }
 0x198   : > { %v2293_v32 = vpop.f32.mrf.mxu1  ;;  %v1649_v38 = vcombine.low %v1572_v27, %v1574_v31 }
 0x199   : > { %v1742_v36 = vpop.f32.mrf.mxu0 }
 0x19a   : > { %v1651_v49 = vadd.f32 %v1649_v38, %v1481_v43 }
 0x19b   : > { %v1744_v39 = vpop.f32.mrf.mxu0 }
 0x19c   : > { %v1983_v41 = vpop.f32.mrf.mxu1  ;;  %v1819_v45 = vcombine.low %v1742_v36, %v1744_v39 }
 0x19d   : > { %v1992_v52 = vadd.f32 %v1983_v41, %v1822_v51 }
 0x19e   : > { %v1912_v47 = vpop.f32.mrf.mxu0  ;;  %v2298_v48 = vpop.f32.mrf.mxu1  ;;  %v1821_v53 = vadd.f32 %v1819_v45, %v1651_v49 }
 0x19f   : > { %v2011_v6 = vmul.f32 %v2006_v56, %v1992_v52 }
 0x1a0   : > { %v1914_v50 = vpop.f32.mrf.mxu0 }
 0x1a1   : > { %v1989_v54 = vcombine.low %v1912_v47, %v1914_v50  ;;  %v2020_v62 = vsel %vm2019_vm15, %v2011_v6, 0.0 }
 0x1a3   : > { %v1991_v57 = vadd.f32 %v1989_v54, %v1821_v53 }
 0x1a5   : > { %v2010_v58 = vmul.f32 %v2008_v55, %v1991_v57 }
 0x1a7   : > { %v2013_v59 = vcombine.high %v2010_v58, %v2010_v58  ;;  %v2016_v60 = vsel %vm2015_vm14, %v2010_v58, 0.0 }
 0x1a9   : > { %v2017_v7 = vsel %vm2015_vm14, %v2013_v59, 0.0 }
 0x1aa   : > { %v2018_v61 = vadd.f32 %v2017_v7, %v2016_v60 }
 0x1ac   : > { %v2021_v63 = vadd.f32 %v2020_v62, %v2018_v61 }
 0x1ae   : > { %2022 = vadd.xlane.f32.xlu0 %v2021_v63 }
 0x237   : > { %v2023_v3 = vpop.xlane.xlu0 %2022 }
 0x238   : > { %v2024_v5 = vmul.f32 0.00390625, %v2023_v3 }
 0x23a   : > { %v2032_v8 = vrot.slane %v2024_v5, %v2031_v12 }
 0x23c   : > { %v2034_v9 = vsub.f32 %v1991_v57, %v2032_v8  ;;  %v2035_v10 = vsub.f32 %v1992_v52, %v2032_v8 }
 0x23e   : > { %v2036_v11 = vmul.f32 %v2034_v9, %v2008_v55  ;;  %v2037_v13 = vmul.f32 %v2035_v10, %v2006_v56 }
 0x240   : > { %v2038_v14 = vmul.f32 %v2036_v11, %v2036_v11  ;;  %v2039_v15 = vmul.f32 %v2037_v13, %v2037_v13 }
 0x242   : > { %v2041_v16 = vcombine.high %v2038_v14, %v2038_v14  ;;  %v2043_v17 = vsel %vm2015_vm14, %v2038_v14, 0.0  ;;  %v2046_v20 = vsel %vm2019_vm15, %v2039_v15, 0.0 }
 0x244   : > { %v2044_v18 = vsel %vm2015_vm14, %v2041_v16, 0.0 }
 0x245   : > { %v2045_v19 = vadd.f32 %v2044_v18, %v2043_v17 }
 0x247   : > { %v2047_v21 = vadd.f32 %v2046_v20, %v2045_v19 }
 0x249   : > { %2048 = vadd.xlane.f32.xlu1 %v2047_v21 }
 0x2d2   : > { %v2049_v4 = vpop.xlane.xlu1 %2048 }
 0x2d3   : > { %v2050_v22 = vmul.f32 0.00390625, %v2049_v4 }
 0x2d5   : > { %v2051_v23 = vadd.f32 1e-05, %v2050_v22 }
 0x2d7   : > { %2357 = vrsqrt.f32 %v2051_v23 }
 0x2e4   : > { %v2358_v24 = vpop.eup %2357 }
 0x2e5   : > { %v2060_v25 = vrot.slane %v2358_v24, %v2031_v12 }
 0x2e7   : > { %v2062_v26 = vmul.f32 %v2060_v25, %v2034_v9  ;;  %v2063_v27 = vmul.f32 %v2060_v25, %v2035_v10 }
 0x2e9   : > { %v2064_v28 = vmul.f32 0.5, %v2062_v26  ;;  %v2065_v29 = vmul.f32 0.5, %v2063_v27 }
 0x2eb   : > { %2359 = vtanh.f32 %v2064_v28 }
 0x2ec   : > { %2361 = vtanh.f32 %v2065_v29 }
 0x2f8   : > { %v2360_v30 = vpop.eup %2359 }
 0x2f9   : > { %v2362_v31 = vpop.eup %2361  ;;  %v2068_v32 = vadd.f32 1.0, %v2360_v30 }
 0x2fa   : > { %v2069_v33 = vadd.f32 1.0, %v2362_v31 }
 0x2fb   : > { %v2070_v34 = vmul.f32 0.5, %v2068_v32 }
 0x2fc   : > { %v2071_v35 = vmul.f32 0.5, %v2069_v33 }
 0x2fd   : > { %v2072_v36 = vmul.f32 %v2070_v34, %v2062_v26 }
 0x2fe   : > { %v2073_v37 = vmul.f32 %v2071_v35, %v2063_v27 }
 0x2ff   : > { %2074 = vst [vmem:[%s300_s11] sm:$0xff] %v2072_v36 }
 0x300   : > { %2075 = vst.msk [vmem:[%s300_s11 + $0x8] sm:$0xf] %vm2019_vm15, %v2073_v37 }
 0x301 PF: > { %s15_s22 = sadd.s32 1, %s2401_s22   ;;  %s2639_s18 = smov %s2393_s20 }
 0x302   : > { %p12_p7 = scmp.ge.s32.totalorder %s15_s22, 6   ;;  %s2640_s19 = smov %s2397_s21 }
 0x303   : > { %s2641_s20 = smov %s2644_s23  ;;  %s2642_s21 = smov %s2648_s24 }
 0x304   :  { %14 = sbr.rel (!%p12_p7) target bundleno = 3 (0x3), region = 84 }

</bundles_post_ra>
